<compile_context>
chip_gen: v6e
topology: v6e:2x2x1
jax: 0.10.0
libtpu: 0.0.40
codegen_flags: <defaults>
</compile_context>

<pallas_src>
import jax
import jax.numpy as jnp
import numpy as np
from jax.experimental import pallas as pl
from jax.experimental.pallas import tpu as pltpu


def _leaky(v):
    return jnp.where(v > 0, v, 0.01 * v)


def critic_kernel(
    # inputs
    x_ref, h0_ref,
    w1_ref, b1_ref, w2_ref, b2_ref,
    wi_ref, bi_ref, wh_ref, bhn_ref,
    w3_ref, b3_ref, w4_ref, b4_ref,
    # outputs
    out_ref, hout_ref,
    # scratch
    h_all,
):
    B, H = h0_ref.shape
    TB = x_ref.shape[0]
    T = TB // B
    f32 = jnp.float32

    # ---- time-independent front end (hoisted out of the recurrence) ----
    # fc1 -> leaky -> fc2 -> leaky over all T*B rows with two matmuls.
    h1 = _leaky(jnp.dot(x_ref[...], w1_ref[...], preferred_element_type=f32) + b1_ref[...])
    h2 = _leaky(jnp.dot(h1, w2_ref[...], preferred_element_type=f32) + b2_ref[...])

    # Input-side GRU gate pre-activations for every timestep in one fused matmul:
    #   gi[:, 0:H]   = x W_ir + (b_ir + b_hr)
    #   gi[:, H:2H]  = x W_iz + (b_iz + b_hz)
    #   gi[:, 2H:3H] = x W_in + b_in
    gi = jnp.dot(h2, wi_ref[...], preferred_element_type=f32) + bi_ref[...]      # (T*B, 3H)

    wh = wh_ref[...]     # (H, 3H) fused [W_hr | W_hz | W_hn], reused every step
    bhn = bhn_ref[...]   # (1, H)

    # ---- serial recurrence: a single MXU matmul per step on the critical path ----
    h = h0_ref[...]      # carried in vregs across the (fully unrolled) loop
    # NOTE: T is small and static (8); for much larger T switch to
    # lax.fori_loop(..., unroll=True) to bound vreg live ranges.
    for t in range(T):
        git = gi[t * B:(t + 1) * B, :]                         # (B, 3H), off the h-chain
        gh = jnp.dot(h, wh, preferred_element_type=f32)        # (B, 3H)
        r = jax.nn.sigmoid(git[:, 0:H] + gh[:, 0:H])
        z = jax.nn.sigmoid(git[:, H:2 * H] + gh[:, H:2 * H])
        n = jnp.tanh(git[:, 2 * H:3 * H] + r * (gh[:, 2 * H:3 * H] + bhn))
        h = (1.0 - z) * n + z * h
        h_all[pl.ds(t * B, B), :] = h                          # stash for the deferred head

    hout_ref[...] = h

    # ---- deferred fc3/fc4 head: two matmuls over all T*B rows, single store ----
    y = _leaky(jnp.dot(h_all[...], w3_ref[...], preferred_element_type=f32) + b3_ref[...])
    out_ref[...] = jnp.dot(y, w4_ref[...], preferred_element_type=f32) + b4_ref[...]


@jax.jit
def critic_forward(x, h0, params):
    """x: (B, T, D) float32, h0: (B, H) float32. Returns ((B, T, O), (1, B, H))."""
    B, T, D = x.shape
    H = params["whr"].shape[0]
    O = params["w4"].shape[1]

    # Time-major flattened rows: row index = t*B + b (so each timestep is contiguous).
    x_flat = jnp.transpose(x, (1, 0, 2)).reshape(T * B, D)

    # Fuse GRU gate weights / pre-sum gate biases (one-time packing per call, under jit).
    wi = jnp.concatenate([params["wir"], params["wiz"], params["win"]], axis=1)     # (32, 3H)
    bi = jnp.concatenate([params["bir"] + params["bhr"],
                          params["biz"] + params["bhz"],
                          params["bin"]], axis=1)                                   # (1, 3H)
    wh = jnp.concatenate([params["whr"], params["whz"], params["whn"]], axis=1)     # (H, 3H)

    in_order = [
        x_flat, h0,
        params["w1"], params["b1"], params["w2"], params["b2"],
        wi, bi, wh, params["bhn"],
        params["w3"], params["b3"], params["w4"], params["b4"],
    ]

    vmem = pl.BlockSpec(memory_space=pltpu.MemorySpace.VMEM)
    out_flat, h_final = pl.pallas_call(
        critic_kernel,
        out_shape=(
            jax.ShapeDtypeStruct((T * B, O), jnp.float32),
            jax.ShapeDtypeStruct((B, H), jnp.float32),
        ),
        in_specs=[vmem] * len(in_order),
        out_specs=(vmem, vmem),
        scratch_shapes=[pltpu.VMEM((T * B, H), jnp.float32)],
    )(*in_order)

    state_value = jnp.transpose(out_flat.reshape(T, B, O), (1, 0, 2))   # (B, T, O)
    return state_value, h_final[None]                                    # (1, B, H)


# ------------------------- deterministic parameter init -------------------------

def make_params(key, input_dim, mlp=(32, 32), rnn=32, output_dim=1):
    keys = jax.random.split(key, 20)
    ki = iter(keys)

    gain_lrelu = float(np.sqrt(2.0 / (1.0 + 0.01 ** 2)))

    def xavier_uniform(k, fan_in, fan_out, gain):
        bound = gain * np.sqrt(6.0 / (fan_in + fan_out))
        return jax.random.uniform(k, (fan_in, fan_out), jnp.float32, -bound, bound)

    def gru_uniform(k, shape, hidden):
        bound = 1.0 / np.sqrt(hidden)
        return jax.random.uniform(k, shape, jnp.float32, -bound, bound)

    H = rnn
    p = {
        "w1": xavier_uniform(next(ki), input_dim, mlp[0], gain_lrelu),
        "b1": jnp.zeros((1, mlp[0]), jnp.float32),
        "w2": xavier_uniform(next(ki), mlp[0], mlp[0], gain_lrelu),
        "b2": jnp.zeros((1, mlp[0]), jnp.float32),
        # GRU gate weights, stored transposed (in_dim, H) for right-multiplication
        "wir": gru_uniform(next(ki), (mlp[0], H), H),
        "wiz": gru_uniform(next(ki), (mlp[0], H), H),
        "win": gru_uniform(next(ki), (mlp[0], H), H),
        "whr": gru_uniform(next(ki), (H, H), H),
        "whz": gru_uniform(next(ki), (H, H), H),
        "whn": gru_uniform(next(ki), (H, H), H),
        "bir": gru_uniform(next(ki), (1, H), H),
        "biz": gru_uniform(next(ki), (1, H), H),
        "bin": gru_uniform(next(ki), (1, H), H),
        "bhr": gru_uniform(next(ki), (1, H), H),
        "bhz": gru_uniform(next(ki), (1, H), H),
        "bhn": gru_uniform(next(ki), (1, H), H),
        "w3": xavier_uniform(next(ki), H, mlp[1], gain_lrelu),
        "b3": jnp.zeros((1, mlp[1]), jnp.float32),
        "w4": xavier_uniform(next(ki), mlp[1], output_dim, 1.0),
        "b4": jnp.zeros((1, output_dim), jnp.float32),
    }
    return p


# ------------------------------ pure-JAX reference ------------------------------

def critic_reference(x, h0, p):
    h1 = _leaky(x @ p["w1"] + p["b1"])
    h2 = _leaky(h1 @ p["w2"] + p["b2"])
    B, T, _ = x.shape
    h = h0
    outs = []
    for t in range(T):
        xt = h2[:, t]
        r = jax.nn.sigmoid(xt @ p["wir"] + p["bir"] + h @ p["whr"] + p["bhr"])
        z = jax.nn.sigmoid(xt @ p["wiz"] + p["biz"] + h @ p["whz"] + p["bhz"])
        n = jnp.tanh(xt @ p["win"] + p["bin"] + r * (h @ p["whn"] + p["bhn"]))
        h = (1.0 - z) * n + z * h
        outs.append(h)
    gru_out = jnp.stack(outs, axis=1)                        # (B, T, H)
    y = _leaky(gru_out @ p["w3"] + p["b3"])
    val = y @ p["w4"] + p["b4"]
    return val, h[None]


if __name__ == "__main__":
    B, T, D = 2, 8, 16
    MLP, RNN, OUT = (32, 32), 32, 1

    key = jax.random.PRNGKey(0)
    kx, kp = jax.random.split(key)
    x = jax.random.normal(kx, (B, T, D), jnp.float32)
    h0 = jnp.zeros((B, RNN), jnp.float32)       # PyTorch h=None -> zeros
    params = make_params(kp, D, MLP, RNN, OUT)

    value, h_final = jax.block_until_ready(critic_forward(x, h0, params))

    value_ref, h_ref = critic_reference(x, h0, params)
    np.testing.assert_allclose(np.asarray(value), np.asarray(value_ref), rtol=1e-4, atol=1e-4)
    np.testing.assert_allclose(np.asarray(h_final), np.asarray(h_ref), rtol=1e-4, atol=1e-4)

    assert value.shape == (B, T, OUT) and h_final.shape == (1, B, RNN)
    print("KERNEL_OK")
</pallas_src>

<mosaic_0001>
module attributes {stable_mosaic.version = 11 : i64} {
  func.func @critic_kernel(%arg0: memref<16x16xf32, #tpu.memory_space<vmem>>, %arg1: memref<2x32xf32, #tpu.memory_space<vmem>>, %arg2: memref<16x32xf32, #tpu.memory_space<vmem>>, %arg3: memref<1x32xf32, #tpu.memory_space<vmem>>, %arg4: memref<32x32xf32, #tpu.memory_space<vmem>>, %arg5: memref<1x32xf32, #tpu.memory_space<vmem>>, %arg6: memref<32x96xf32, #tpu.memory_space<vmem>>, %arg7: memref<1x96xf32, #tpu.memory_space<vmem>>, %arg8: memref<32x96xf32, #tpu.memory_space<vmem>>, %arg9: memref<1x32xf32, #tpu.memory_space<vmem>>, %arg10: memref<32x32xf32, #tpu.memory_space<vmem>>, %arg11: memref<1x32xf32, #tpu.memory_space<vmem>>, %arg12: memref<32x1xf32, #tpu.memory_space<vmem>>, %arg13: memref<1x1xf32, #tpu.memory_space<vmem>>, %arg14: memref<16x1xf32, #tpu.memory_space<vmem>>, %arg15: memref<2x32xf32, #tpu.memory_space<vmem>>, %arg16: memref<16x32xf32, #tpu.memory_space<vmem>>) attributes {dimension_semantics = [], scalar_prefetch = 0 : i64, scratch_operands = 1 : i64, tpu.core_type = #tpu.core_type<tc>} {
    %c0 = arith.constant 0 : index
    %c0_0 = arith.constant 0 : index
    %0 = vector.load %arg0[%c0, %c0_0] : memref<16x16xf32, #tpu.memory_space<vmem>>, vector<16x16xf32>
    %c0_1 = arith.constant 0 : index
    %c0_2 = arith.constant 0 : index
    %1 = vector.load %arg2[%c0_1, %c0_2] : memref<16x32xf32, #tpu.memory_space<vmem>>, vector<16x32xf32>
    %cst = arith.constant dense<0.000000e+00> : vector<16x32xf32>
    %2 = tpu.matmul %0, %1, %cst {dimension_numbers = #tpu.dot_dimension_numbers<[1], [0], [0], [1], [0, 0, 1, 1], [], []>} : vector<16x16xf32>, vector<16x32xf32>, vector<16x32xf32> -> vector<16x32xf32>
    %c0_3 = arith.constant 0 : index
    %c0_4 = arith.constant 0 : index
    %3 = vector.load %arg3[%c0_3, %c0_4] : memref<1x32xf32, #tpu.memory_space<vmem>>, vector<1x32xf32>
    %4 = vector.broadcast %3 : vector<1x32xf32> to vector<16x32xf32>
    %5 = arith.addf %2, %4 : vector<16x32xf32>
    %cst_5 = arith.constant 0.000000e+00 : f32
    %6 = vector.broadcast %cst_5 : f32 to vector<16x32xf32>
    %7 = arith.cmpf ogt, %5, %6 : vector<16x32xf32>
    %cst_6 = arith.constant 0.00999999977 : f32
    %8 = vector.broadcast %cst_6 : f32 to vector<16x32xf32>
    %9 = arith.mulf %8, %5 : vector<16x32xf32>
    %10 = arith.select %7, %5, %9 : vector<16x32xi1>, vector<16x32xf32>
    %c0_7 = arith.constant 0 : index
    %c0_8 = arith.constant 0 : index
    %11 = vector.load %arg4[%c0_7, %c0_8] : memref<32x32xf32, #tpu.memory_space<vmem>>, vector<32x32xf32>
    %cst_9 = arith.constant dense<0.000000e+00> : vector<16x32xf32>
    %12 = tpu.matmul %10, %11, %cst_9 {dimension_numbers = #tpu.dot_dimension_numbers<[1], [0], [0], [1], [0, 0, 1, 1], [], []>} : vector<16x32xf32>, vector<32x32xf32>, vector<16x32xf32> -> vector<16x32xf32>
    %c0_10 = arith.constant 0 : index
    %c0_11 = arith.constant 0 : index
    %13 = vector.load %arg5[%c0_10, %c0_11] : memref<1x32xf32, #tpu.memory_space<vmem>>, vector<1x32xf32>
    %14 = vector.broadcast %13 : vector<1x32xf32> to vector<16x32xf32>
    %15 = arith.addf %12, %14 : vector<16x32xf32>
    %cst_12 = arith.constant 0.000000e+00 : f32
    %16 = vector.broadcast %cst_12 : f32 to vector<16x32xf32>
    %17 = arith.cmpf ogt, %15, %16 : vector<16x32xf32>
    %cst_13 = arith.constant 0.00999999977 : f32
    %18 = vector.broadcast %cst_13 : f32 to vector<16x32xf32>
    %19 = arith.mulf %18, %15 : vector<16x32xf32>
    %20 = arith.select %17, %15, %19 : vector<16x32xi1>, vector<16x32xf32>
    %c0_14 = arith.constant 0 : index
    %c0_15 = arith.constant 0 : index
    %21 = vector.load %arg6[%c0_14, %c0_15] : memref<32x96xf32, #tpu.memory_space<vmem>>, vector<32x96xf32>
    %cst_16 = arith.constant dense<0.000000e+00> : vector<16x96xf32>
    %22 = tpu.matmul %20, %21, %cst_16 {dimension_numbers = #tpu.dot_dimension_numbers<[1], [0], [0], [1], [0, 0, 1, 1], [], []>} : vector<16x32xf32>, vector<32x96xf32>, vector<16x96xf32> -> vector<16x96xf32>
    %c0_17 = arith.constant 0 : index
    %c0_18 = arith.constant 0 : index
    %23 = vector.load %arg7[%c0_17, %c0_18] : memref<1x96xf32, #tpu.memory_space<vmem>>, vector<1x96xf32>
    %24 = vector.broadcast %23 : vector<1x96xf32> to vector<16x96xf32>
    %25 = arith.addf %22, %24 : vector<16x96xf32>
    %c0_19 = arith.constant 0 : index
    %c0_20 = arith.constant 0 : index
    %26 = vector.load %arg8[%c0_19, %c0_20] : memref<32x96xf32, #tpu.memory_space<vmem>>, vector<32x96xf32>
    %c0_21 = arith.constant 0 : index
    %c0_22 = arith.constant 0 : index
    %27 = vector.load %arg9[%c0_21, %c0_22] : memref<1x32xf32, #tpu.memory_space<vmem>>, vector<1x32xf32>
    %c0_23 = arith.constant 0 : index
    %c0_24 = arith.constant 0 : index
    %28 = vector.load %arg1[%c0_23, %c0_24] : memref<2x32xf32, #tpu.memory_space<vmem>>, vector<2x32xf32>
    %29 = vector.extract_strided_slice %25 {offsets = [0, 0], sizes = [2, 96], strides = [1, 1]} : vector<16x96xf32> to vector<2x96xf32>
    %cst_25 = arith.constant dense<0.000000e+00> : vector<2x96xf32>
    %30 = tpu.matmul %28, %26, %cst_25 {dimension_numbers = #tpu.dot_dimension_numbers<[1], [0], [0], [1], [0, 0, 1, 1], [], []>} : vector<2x32xf32>, vector<32x96xf32>, vector<2x96xf32> -> vector<2x96xf32>
    %31 = vector.extract_strided_slice %29 {offsets = [0, 0], sizes = [2, 32], strides = [1, 1]} : vector<2x96xf32> to vector<2x32xf32>
    %32 = vector.extract_strided_slice %30 {offsets = [0, 0], sizes = [2, 32], strides = [1, 1]} : vector<2x96xf32> to vector<2x32xf32>
    %33 = arith.addf %31, %32 : vector<2x32xf32>
    %34 = arith.negf %33 : vector<2x32xf32>
    %35 = math.exp %34 : vector<2x32xf32>
    %cst_26 = arith.constant 1.000000e+00 : f32
    %36 = vector.broadcast %cst_26 : f32 to vector<2x32xf32>
    %37 = arith.addf %36, %35 : vector<2x32xf32>
    %38 = arith.divf %36, %37 : vector<2x32xf32>
    %39 = vector.extract_strided_slice %29 {offsets = [0, 32], sizes = [2, 32], strides = [1, 1]} : vector<2x96xf32> to vector<2x32xf32>
    %40 = vector.extract_strided_slice %30 {offsets = [0, 32], sizes = [2, 32], strides = [1, 1]} : vector<2x96xf32> to vector<2x32xf32>
    %41 = arith.addf %39, %40 : vector<2x32xf32>
    %42 = arith.negf %41 : vector<2x32xf32>
    %43 = math.exp %42 : vector<2x32xf32>
    %cst_27 = arith.constant 1.000000e+00 : f32
    %44 = vector.broadcast %cst_27 : f32 to vector<2x32xf32>
    %45 = arith.addf %44, %43 : vector<2x32xf32>
    %46 = arith.divf %44, %45 : vector<2x32xf32>
    %47 = vector.extract_strided_slice %29 {offsets = [0, 64], sizes = [2, 32], strides = [1, 1]} : vector<2x96xf32> to vector<2x32xf32>
    %48 = vector.extract_strided_slice %30 {offsets = [0, 64], sizes = [2, 32], strides = [1, 1]} : vector<2x96xf32> to vector<2x32xf32>
    %49 = vector.broadcast %27 : vector<1x32xf32> to vector<2x32xf32>
    %50 = arith.addf %48, %49 : vector<2x32xf32>
    %51 = arith.mulf %38, %50 : vector<2x32xf32>
    %52 = arith.addf %47, %51 : vector<2x32xf32>
    %53 = math.tanh %52 : vector<2x32xf32>
    %cst_28 = arith.constant 1.000000e+00 : f32
    %54 = vector.broadcast %cst_28 : f32 to vector<2x32xf32>
    %55 = arith.subf %54, %46 : vector<2x32xf32>
    %56 = arith.mulf %55, %53 : vector<2x32xf32>
    %57 = arith.mulf %46, %28 : vector<2x32xf32>
    %58 = arith.addf %56, %57 : vector<2x32xf32>
    %c0_29 = arith.constant 0 : index
    %c0_30 = arith.constant 0 : index
    %59 = vector.load %arg16[%c0_29, %c0_30] : memref<16x32xf32, #tpu.memory_space<vmem>>, vector<2x32xf32>
    tpu.vector_store %arg16[%c0_29, %c0_30], %58 {strides = array<i32>} : memref<16x32xf32, #tpu.memory_space<vmem>>, vector<2x32xf32>,
    %60 = vector.extract_strided_slice %25 {offsets = [2, 0], sizes = [2, 96], strides = [1, 1]} : vector<16x96xf32> to vector<2x96xf32>
    %cst_31 = arith.constant dense<0.000000e+00> : vector<2x96xf32>
    %61 = tpu.matmul %58, %26, %cst_31 {dimension_numbers = #tpu.dot_dimension_numbers<[1], [0], [0], [1], [0, 0, 1, 1], [], []>} : vector<2x32xf32>, vector<32x96xf32>, vector<2x96xf32> -> vector<2x96xf32>
    %62 = vector.extract_strided_slice %60 {offsets = [0, 0], sizes = [2, 32], strides = [1, 1]} : vector<2x96xf32> to vector<2x32xf32>
    %63 = vector.extract_strided_slice %61 {offsets = [0, 0], sizes = [2, 32], strides = [1, 1]} : vector<2x96xf32> to vector<2x32xf32>
    %64 = arith.addf %62, %63 : vector<2x32xf32>
    %65 = arith.negf %64 : vector<2x32xf32>
    %66 = math.exp %65 : vector<2x32xf32>
    %cst_32 = arith.constant 1.000000e+00 : f32
    %67 = vector.broadcast %cst_32 : f32 to vector<2x32xf32>
    %68 = arith.addf %67, %66 : vector<2x32xf32>
    %69 = arith.divf %67, %68 : vector<2x32xf32>
    %70 = vector.extract_strided_slice %60 {offsets = [0, 32], sizes = [2, 32], strides = [1, 1]} : vector<2x96xf32> to vector<2x32xf32>
    %71 = vector.extract_strided_slice %61 {offsets = [0, 32], sizes = [2, 32], strides = [1, 1]} : vector<2x96xf32> to vector<2x32xf32>
    %72 = arith.addf %70, %71 : vector<2x32xf32>
    %73 = arith.negf %72 : vector<2x32xf32>
    %74 = math.exp %73 : vector<2x32xf32>
    %cst_33 = arith.constant 1.000000e+00 : f32
    %75 = vector.broadcast %cst_33 : f32 to vector<2x32xf32>
    %76 = arith.addf %75, %74 : vector<2x32xf32>
    %77 = arith.divf %75, %76 : vector<2x32xf32>
    %78 = vector.extract_strided_slice %60 {offsets = [0, 64], sizes = [2, 32], strides = [1, 1]} : vector<2x96xf32> to vector<2x32xf32>
    %79 = vector.extract_strided_slice %61 {offsets = [0, 64], sizes = [2, 32], strides = [1, 1]} : vector<2x96xf32> to vector<2x32xf32>
    %80 = vector.broadcast %27 : vector<1x32xf32> to vector<2x32xf32>
    %81 = arith.addf %79, %80 : vector<2x32xf32>
    %82 = arith.mulf %69, %81 : vector<2x32xf32>
    %83 = arith.addf %78, %82 : vector<2x32xf32>
    %84 = math.tanh %83 : vector<2x32xf32>
    %cst_34 = arith.constant 1.000000e+00 : f32
    %85 = vector.broadcast %cst_34 : f32 to vector<2x32xf32>
    %86 = arith.subf %85, %77 : vector<2x32xf32>
    %87 = arith.mulf %86, %84 : vector<2x32xf32>
    %88 = arith.mulf %77, %58 : vector<2x32xf32>
    %89 = arith.addf %87, %88 : vector<2x32xf32>
    %c2 = arith.constant 2 : index
    %c0_35 = arith.constant 0 : index
    %90 = vector.load %arg16[%c2, %c0_35] : memref<16x32xf32, #tpu.memory_space<vmem>>, vector<2x32xf32>
    tpu.vector_store %arg16[%c2, %c0_35], %89 {strides = array<i32>} : memref<16x32xf32, #tpu.memory_space<vmem>>, vector<2x32xf32>,
    %91 = vector.extract_strided_slice %25 {offsets = [4, 0], sizes = [2, 96], strides = [1, 1]} : vector<16x96xf32> to vector<2x96xf32>
    %cst_36 = arith.constant dense<0.000000e+00> : vector<2x96xf32>
    %92 = tpu.matmul %89, %26, %cst_36 {dimension_numbers = #tpu.dot_dimension_numbers<[1], [0], [0], [1], [0, 0, 1, 1], [], []>} : vector<2x32xf32>, vector<32x96xf32>, vector<2x96xf32> -> vector<2x96xf32>
    %93 = vector.extract_strided_slice %91 {offsets = [0, 0], sizes = [2, 32], strides = [1, 1]} : vector<2x96xf32> to vector<2x32xf32>
    %94 = vector.extract_strided_slice %92 {offsets = [0, 0], sizes = [2, 32], strides = [1, 1]} : vector<2x96xf32> to vector<2x32xf32>
    %95 = arith.addf %93, %94 : vector<2x32xf32>
    %96 = arith.negf %95 : vector<2x32xf32>
    %97 = math.exp %96 : vector<2x32xf32>
    %cst_37 = arith.constant 1.000000e+00 : f32
    %98 = vector.broadcast %cst_37 : f32 to vector<2x32xf32>
    %99 = arith.addf %98, %97 : vector<2x32xf32>
    %100 = arith.divf %98, %99 : vector<2x32xf32>
    %101 = vector.extract_strided_slice %91 {offsets = [0, 32], sizes = [2, 32], strides = [1, 1]} : vector<2x96xf32> to vector<2x32xf32>
    %102 = vector.extract_strided_slice %92 {offsets = [0, 32], sizes = [2, 32], strides = [1, 1]} : vector<2x96xf32> to vector<2x32xf32>
    %103 = arith.addf %101, %102 : vector<2x32xf32>
    %104 = arith.negf %103 : vector<2x32xf32>
    %105 = math.exp %104 : vector<2x32xf32>
    %cst_38 = arith.constant 1.000000e+00 : f32
    %106 = vector.broadcast %cst_38 : f32 to vector<2x32xf32>
    %107 = arith.addf %106, %105 : vector<2x32xf32>
    %108 = arith.divf %106, %107 : vector<2x32xf32>
    %109 = vector.extract_strided_slice %91 {offsets = [0, 64], sizes = [2, 32], strides = [1, 1]} : vector<2x96xf32> to vector<2x32xf32>
    %110 = vector.extract_strided_slice %92 {offsets = [0, 64], sizes = [2, 32], strides = [1, 1]} : vector<2x96xf32> to vector<2x32xf32>
    %111 = vector.broadcast %27 : vector<1x32xf32> to vector<2x32xf32>
    %112 = arith.addf %110, %111 : vector<2x32xf32>
    %113 = arith.mulf %100, %112 : vector<2x32xf32>
    %114 = arith.addf %109, %113 : vector<2x32xf32>
    %115 = math.tanh %114 : vector<2x32xf32>
    %cst_39 = arith.constant 1.000000e+00 : f32
    %116 = vector.broadcast %cst_39 : f32 to vector<2x32xf32>
    %117 = arith.subf %116, %108 : vector<2x32xf32>
    %118 = arith.mulf %117, %115 : vector<2x32xf32>
    %119 = arith.mulf %108, %89 : vector<2x32xf32>
    %120 = arith.addf %118, %119 : vector<2x32xf32>
    %c4 = arith.constant 4 : index
    %c0_40 = arith.constant 0 : index
    %121 = vector.load %arg16[%c4, %c0_40] : memref<16x32xf32, #tpu.memory_space<vmem>>, vector<2x32xf32>
    tpu.vector_store %arg16[%c4, %c0_40], %120 {strides = array<i32>} : memref<16x32xf32, #tpu.memory_space<vmem>>, vector<2x32xf32>,
    %122 = vector.extract_strided_slice %25 {offsets = [6, 0], sizes = [2, 96], strides = [1, 1]} : vector<16x96xf32> to vector<2x96xf32>
    %cst_41 = arith.constant dense<0.000000e+00> : vector<2x96xf32>
    %123 = tpu.matmul %120, %26, %cst_41 {dimension_numbers = #tpu.dot_dimension_numbers<[1], [0], [0], [1], [0, 0, 1, 1], [], []>} : vector<2x32xf32>, vector<32x96xf32>, vector<2x96xf32> -> vector<2x96xf32>
    %124 = vector.extract_strided_slice %122 {offsets = [0, 0], sizes = [2, 32], strides = [1, 1]} : vector<2x96xf32> to vector<2x32xf32>
    %125 = vector.extract_strided_slice %123 {offsets = [0, 0], sizes = [2, 32], strides = [1, 1]} : vector<2x96xf32> to vector<2x32xf32>
    %126 = arith.addf %124, %125 : vector<2x32xf32>
    %127 = arith.negf %126 : vector<2x32xf32>
    %128 = math.exp %127 : vector<2x32xf32>
    %cst_42 = arith.constant 1.000000e+00 : f32
    %129 = vector.broadcast %cst_42 : f32 to vector<2x32xf32>
    %130 = arith.addf %129, %128 : vector<2x32xf32>
    %131 = arith.divf %129, %130 : vector<2x32xf32>
    %132 = vector.extract_strided_slice %122 {offsets = [0, 32], sizes = [2, 32], strides = [1, 1]} : vector<2x96xf32> to vector<2x32xf32>
    %133 = vector.extract_strided_slice %123 {offsets = [0, 32], sizes = [2, 32], strides = [1, 1]} : vector<2x96xf32> to vector<2x32xf32>
    %134 = arith.addf %132, %133 : vector<2x32xf32>
    %135 = arith.negf %134 : vector<2x32xf32>
    %136 = math.exp %135 : vector<2x32xf32>
    %cst_43 = arith.constant 1.000000e+00 : f32
    %137 = vector.broadcast %cst_43 : f32 to vector<2x32xf32>
    %138 = arith.addf %137, %136 : vector<2x32xf32>
    %139 = arith.divf %137, %138 : vector<2x32xf32>
    %140 = vector.extract_strided_slice %122 {offsets = [0, 64], sizes = [2, 32], strides = [1, 1]} : vector<2x96xf32> to vector<2x32xf32>
    %141 = vector.extract_strided_slice %123 {offsets = [0, 64], sizes = [2, 32], strides = [1, 1]} : vector<2x96xf32> to vector<2x32xf32>
    %142 = vector.broadcast %27 : vector<1x32xf32> to vector<2x32xf32>
    %143 = arith.addf %141, %142 : vector<2x32xf32>
    %144 = arith.mulf %131, %143 : vector<2x32xf32>
    %145 = arith.addf %140, %144 : vector<2x32xf32>
    %146 = math.tanh %145 : vector<2x32xf32>
    %cst_44 = arith.constant 1.000000e+00 : f32
    %147 = vector.broadcast %cst_44 : f32 to vector<2x32xf32>
    %148 = arith.subf %147, %139 : vector<2x32xf32>
    %149 = arith.mulf %148, %146 : vector<2x32xf32>
    %150 = arith.mulf %139, %120 : vector<2x32xf32>
    %151 = arith.addf %149, %150 : vector<2x32xf32>
    %c6 = arith.constant 6 : index
    %c0_45 = arith.constant 0 : index
    %152 = vector.load %arg16[%c6, %c0_45] : memref<16x32xf32, #tpu.memory_space<vmem>>, vector<2x32xf32>
    tpu.vector_store %arg16[%c6, %c0_45], %151 {strides = array<i32>} : memref<16x32xf32, #tpu.memory_space<vmem>>, vector<2x32xf32>,
    %153 = vector.extract_strided_slice %25 {offsets = [8, 0], sizes = [2, 96], strides = [1, 1]} : vector<16x96xf32> to vector<2x96xf32>
    %cst_46 = arith.constant dense<0.000000e+00> : vector<2x96xf32>
    %154 = tpu.matmul %151, %26, %cst_46 {dimension_numbers = #tpu.dot_dimension_numbers<[1], [0], [0], [1], [0, 0, 1, 1], [], []>} : vector<2x32xf32>, vector<32x96xf32>, vector<2x96xf32> -> vector<2x96xf32>
    %155 = vector.extract_strided_slice %153 {offsets = [0, 0], sizes = [2, 32], strides = [1, 1]} : vector<2x96xf32> to vector<2x32xf32>
    %156 = vector.extract_strided_slice %154 {offsets = [0, 0], sizes = [2, 32], strides = [1, 1]} : vector<2x96xf32> to vector<2x32xf32>
    %157 = arith.addf %155, %156 : vector<2x32xf32>
    %158 = arith.negf %157 : vector<2x32xf32>
    %159 = math.exp %158 : vector<2x32xf32>
    %cst_47 = arith.constant 1.000000e+00 : f32
    %160 = vector.broadcast %cst_47 : f32 to vector<2x32xf32>
    %161 = arith.addf %160, %159 : vector<2x32xf32>
    %162 = arith.divf %160, %161 : vector<2x32xf32>
    %163 = vector.extract_strided_slice %153 {offsets = [0, 32], sizes = [2, 32], strides = [1, 1]} : vector<2x96xf32> to vector<2x32xf32>
    %164 = vector.extract_strided_slice %154 {offsets = [0, 32], sizes = [2, 32], strides = [1, 1]} : vector<2x96xf32> to vector<2x32xf32>
    %165 = arith.addf %163, %164 : vector<2x32xf32>
    %166 = arith.negf %165 : vector<2x32xf32>
    %167 = math.exp %166 : vector<2x32xf32>
    %cst_48 = arith.constant 1.000000e+00 : f32
    %168 = vector.broadcast %cst_48 : f32 to vector<2x32xf32>
    %169 = arith.addf %168, %167 : vector<2x32xf32>
    %170 = arith.divf %168, %169 : vector<2x32xf32>
    %171 = vector.extract_strided_slice %153 {offsets = [0, 64], sizes = [2, 32], strides = [1, 1]} : vector<2x96xf32> to vector<2x32xf32>
    %172 = vector.extract_strided_slice %154 {offsets = [0, 64], sizes = [2, 32], strides = [1, 1]} : vector<2x96xf32> to vector<2x32xf32>
    %173 = vector.broadcast %27 : vector<1x32xf32> to vector<2x32xf32>
    %174 = arith.addf %172, %173 : vector<2x32xf32>
    %175 = arith.mulf %162, %174 : vector<2x32xf32>
    %176 = arith.addf %171, %175 : vector<2x32xf32>
    %177 = math.tanh %176 : vector<2x32xf32>
    %cst_49 = arith.constant 1.000000e+00 : f32
    %178 = vector.broadcast %cst_49 : f32 to vector<2x32xf32>
    %179 = arith.subf %178, %170 : vector<2x32xf32>
    %180 = arith.mulf %179, %177 : vector<2x32xf32>
    %181 = arith.mulf %170, %151 : vector<2x32xf32>
    %182 = arith.addf %180, %181 : vector<2x32xf32>
    %c8 = arith.constant 8 : index
    %c0_50 = arith.constant 0 : index
    %183 = vector.load %arg16[%c8, %c0_50] : memref<16x32xf32, #tpu.memory_space<vmem>>, vector<2x32xf32>
    tpu.vector_store %arg16[%c8, %c0_50], %182 {strides = array<i32>} : memref<16x32xf32, #tpu.memory_space<vmem>>, vector<2x32xf32>,
    %184 = vector.extract_strided_slice %25 {offsets = [10, 0], sizes = [2, 96], strides = [1, 1]} : vector<16x96xf32> to vector<2x96xf32>
    %cst_51 = arith.constant dense<0.000000e+00> : vector<2x96xf32>
    %185 = tpu.matmul %182, %26, %cst_51 {dimension_numbers = #tpu.dot_dimension_numbers<[1], [0], [0], [1], [0, 0, 1, 1], [], []>} : vector<2x32xf32>, vector<32x96xf32>, vector<2x96xf32> -> vector<2x96xf32>
    %186 = vector.extract_strided_slice %184 {offsets = [0, 0], sizes = [2, 32], strides = [1, 1]} : vector<2x96xf32> to vector<2x32xf32>
    %187 = vector.extract_strided_slice %185 {offsets = [0, 0], sizes = [2, 32], strides = [1, 1]} : vector<2x96xf32> to vector<2x32xf32>
    %188 = arith.addf %186, %187 : vector<2x32xf32>
    %189 = arith.negf %188 : vector<2x32xf32>
    %190 = math.exp %189 : vector<2x32xf32>
    %cst_52 = arith.constant 1.000000e+00 : f32
    %191 = vector.broadcast %cst_52 : f32 to vector<2x32xf32>
    %192 = arith.addf %191, %190 : vector<2x32xf32>
    %193 = arith.divf %191, %192 : vector<2x32xf32>
    %194 = vector.extract_strided_slice %184 {offsets = [0, 32], sizes = [2, 32], strides = [1, 1]} : vector<2x96xf32> to vector<2x32xf32>
    %195 = vector.extract_strided_slice %185 {offsets = [0, 32], sizes = [2, 32], strides = [1, 1]} : vector<2x96xf32> to vector<2x32xf32>
    %196 = arith.addf %194, %195 : vector<2x32xf32>
    %197 = arith.negf %196 : vector<2x32xf32>
    %198 = math.exp %197 : vector<2x32xf32>
    %cst_53 = arith.constant 1.000000e+00 : f32
    %199 = vector.broadcast %cst_53 : f32 to vector<2x32xf32>
    %200 = arith.addf %199, %198 : vector<2x32xf32>
    %201 = arith.divf %199, %200 : vector<2x32xf32>
    %202 = vector.extract_strided_slice %184 {offsets = [0, 64], sizes = [2, 32], strides = [1, 1]} : vector<2x96xf32> to vector<2x32xf32>
    %203 = vector.extract_strided_slice %185 {offsets = [0, 64], sizes = [2, 32], strides = [1, 1]} : vector<2x96xf32> to vector<2x32xf32>
    %204 = vector.broadcast %27 : vector<1x32xf32> to vector<2x32xf32>
    %205 = arith.addf %203, %204 : vector<2x32xf32>
    %206 = arith.mulf %193, %205 : vector<2x32xf32>
    %207 = arith.addf %202, %206 : vector<2x32xf32>
    %208 = math.tanh %207 : vector<2x32xf32>
    %cst_54 = arith.constant 1.000000e+00 : f32
    %209 = vector.broadcast %cst_54 : f32 to vector<2x32xf32>
    %210 = arith.subf %209, %201 : vector<2x32xf32>
    %211 = arith.mulf %210, %208 : vector<2x32xf32>
    %212 = arith.mulf %201, %182 : vector<2x32xf32>
    %213 = arith.addf %211, %212 : vector<2x32xf32>
    %c10 = arith.constant 10 : index
    %c0_55 = arith.constant 0 : index
    %214 = vector.load %arg16[%c10, %c0_55] : memref<16x32xf32, #tpu.memory_space<vmem>>, vector<2x32xf32>
    tpu.vector_store %arg16[%c10, %c0_55], %213 {strides = array<i32>} : memref<16x32xf32, #tpu.memory_space<vmem>>, vector<2x32xf32>,
    %215 = vector.extract_strided_slice %25 {offsets = [12, 0], sizes = [2, 96], strides = [1, 1]} : vector<16x96xf32> to vector<2x96xf32>
    %cst_56 = arith.constant dense<0.000000e+00> : vector<2x96xf32>
    %216 = tpu.matmul %213, %26, %cst_56 {dimension_numbers = #tpu.dot_dimension_numbers<[1], [0], [0], [1], [0, 0, 1, 1], [], []>} : vector<2x32xf32>, vector<32x96xf32>, vector<2x96xf32> -> vector<2x96xf32>
    %217 = vector.extract_strided_slice %215 {offsets = [0, 0], sizes = [2, 32], strides = [1, 1]} : vector<2x96xf32> to vector<2x32xf32>
    %218 = vector.extract_strided_slice %216 {offsets = [0, 0], sizes = [2, 32], strides = [1, 1]} : vector<2x96xf32> to vector<2x32xf32>
    %219 = arith.addf %217, %218 : vector<2x32xf32>
    %220 = arith.negf %219 : vector<2x32xf32>
    %221 = math.exp %220 : vector<2x32xf32>
    %cst_57 = arith.constant 1.000000e+00 : f32
    %222 = vector.broadcast %cst_57 : f32 to vector<2x32xf32>
    %223 = arith.addf %222, %221 : vector<2x32xf32>
    %224 = arith.divf %222, %223 : vector<2x32xf32>
    %225 = vector.extract_strided_slice %215 {offsets = [0, 32], sizes = [2, 32], strides = [1, 1]} : vector<2x96xf32> to vector<2x32xf32>
    %226 = vector.extract_strided_slice %216 {offsets = [0, 32], sizes = [2, 32], strides = [1, 1]} : vector<2x96xf32> to vector<2x32xf32>
    %227 = arith.addf %225, %226 : vector<2x32xf32>
    %228 = arith.negf %227 : vector<2x32xf32>
    %229 = math.exp %228 : vector<2x32xf32>
    %cst_58 = arith.constant 1.000000e+00 : f32
    %230 = vector.broadcast %cst_58 : f32 to vector<2x32xf32>
    %231 = arith.addf %230, %229 : vector<2x32xf32>
    %232 = arith.divf %230, %231 : vector<2x32xf32>
    %233 = vector.extract_strided_slice %215 {offsets = [0, 64], sizes = [2, 32], strides = [1, 1]} : vector<2x96xf32> to vector<2x32xf32>
    %234 = vector.extract_strided_slice %216 {offsets = [0, 64], sizes = [2, 32], strides = [1, 1]} : vector<2x96xf32> to vector<2x32xf32>
    %235 = vector.broadcast %27 : vector<1x32xf32> to vector<2x32xf32>
    %236 = arith.addf %234, %235 : vector<2x32xf32>
    %237 = arith.mulf %224, %236 : vector<2x32xf32>
    %238 = arith.addf %233, %237 : vector<2x32xf32>
    %239 = math.tanh %238 : vector<2x32xf32>
    %cst_59 = arith.constant 1.000000e+00 : f32
    %240 = vector.broadcast %cst_59 : f32 to vector<2x32xf32>
    %241 = arith.subf %240, %232 : vector<2x32xf32>
    %242 = arith.mulf %241, %239 : vector<2x32xf32>
    %243 = arith.mulf %232, %213 : vector<2x32xf32>
    %244 = arith.addf %242, %243 : vector<2x32xf32>
    %c12 = arith.constant 12 : index
    %c0_60 = arith.constant 0 : index
    %245 = vector.load %arg16[%c12, %c0_60] : memref<16x32xf32, #tpu.memory_space<vmem>>, vector<2x32xf32>
    tpu.vector_store %arg16[%c12, %c0_60], %244 {strides = array<i32>} : memref<16x32xf32, #tpu.memory_space<vmem>>, vector<2x32xf32>,
    %246 = vector.extract_strided_slice %25 {offsets = [14, 0], sizes = [2, 96], strides = [1, 1]} : vector<16x96xf32> to vector<2x96xf32>
    %cst_61 = arith.constant dense<0.000000e+00> : vector<2x96xf32>
    %247 = tpu.matmul %244, %26, %cst_61 {dimension_numbers = #tpu.dot_dimension_numbers<[1], [0], [0], [1], [0, 0, 1, 1], [], []>} : vector<2x32xf32>, vector<32x96xf32>, vector<2x96xf32> -> vector<2x96xf32>
    %248 = vector.extract_strided_slice %246 {offsets = [0, 0], sizes = [2, 32], strides = [1, 1]} : vector<2x96xf32> to vector<2x32xf32>
    %249 = vector.extract_strided_slice %247 {offsets = [0, 0], sizes = [2, 32], strides = [1, 1]} : vector<2x96xf32> to vector<2x32xf32>
    %250 = arith.addf %248, %249 : vector<2x32xf32>
    %251 = arith.negf %250 : vector<2x32xf32>
    %252 = math.exp %251 : vector<2x32xf32>
    %cst_62 = arith.constant 1.000000e+00 : f32
    %253 = vector.broadcast %cst_62 : f32 to vector<2x32xf32>
    %254 = arith.addf %253, %252 : vector<2x32xf32>
    %255 = arith.divf %253, %254 : vector<2x32xf32>
    %256 = vector.extract_strided_slice %246 {offsets = [0, 32], sizes = [2, 32], strides = [1, 1]} : vector<2x96xf32> to vector<2x32xf32>
    %257 = vector.extract_strided_slice %247 {offsets = [0, 32], sizes = [2, 32], strides = [1, 1]} : vector<2x96xf32> to vector<2x32xf32>
    %258 = arith.addf %256, %257 : vector<2x32xf32>
    %259 = arith.negf %258 : vector<2x32xf32>
    %260 = math.exp %259 : vector<2x32xf32>
    %cst_63 = arith.constant 1.000000e+00 : f32
    %261 = vector.broadcast %cst_63 : f32 to vector<2x32xf32>
    %262 = arith.addf %261, %260 : vector<2x32xf32>
    %263 = arith.divf %261, %262 : vector<2x32xf32>
    %264 = vector.extract_strided_slice %246 {offsets = [0, 64], sizes = [2, 32], strides = [1, 1]} : vector<2x96xf32> to vector<2x32xf32>
    %265 = vector.extract_strided_slice %247 {offsets = [0, 64], sizes = [2, 32], strides = [1, 1]} : vector<2x96xf32> to vector<2x32xf32>
    %266 = vector.broadcast %27 : vector<1x32xf32> to vector<2x32xf32>
    %267 = arith.addf %265, %266 : vector<2x32xf32>
    %268 = arith.mulf %255, %267 : vector<2x32xf32>
    %269 = arith.addf %264, %268 : vector<2x32xf32>
    %270 = math.tanh %269 : vector<2x32xf32>
    %cst_64 = arith.constant 1.000000e+00 : f32
    %271 = vector.broadcast %cst_64 : f32 to vector<2x32xf32>
    %272 = arith.subf %271, %263 : vector<2x32xf32>
    %273 = arith.mulf %272, %270 : vector<2x32xf32>
    %274 = arith.mulf %263, %244 : vector<2x32xf32>
    %275 = arith.addf %273, %274 : vector<2x32xf32>
    %c14 = arith.constant 14 : index
    %c0_65 = arith.constant 0 : index
    %276 = vector.load %arg16[%c14, %c0_65] : memref<16x32xf32, #tpu.memory_space<vmem>>, vector<2x32xf32>
    tpu.vector_store %arg16[%c14, %c0_65], %275 {strides = array<i32>} : memref<16x32xf32, #tpu.memory_space<vmem>>, vector<2x32xf32>,
    %c0_66 = arith.constant 0 : index
    %c0_67 = arith.constant 0 : index
    %277 = vector.load %arg15[%c0_66, %c0_67] : memref<2x32xf32, #tpu.memory_space<vmem>>, vector<2x32xf32>
    tpu.vector_store %arg15[%c0_66, %c0_67], %275 {strides = array<i32>} : memref<2x32xf32, #tpu.memory_space<vmem>>, vector<2x32xf32>,
    %c0_68 = arith.constant 0 : index
    %c0_69 = arith.constant 0 : index
    %278 = vector.load %arg16[%c0_68, %c0_69] : memref<16x32xf32, #tpu.memory_space<vmem>>, vector<16x32xf32>
    %c0_70 = arith.constant 0 : index
    %c0_71 = arith.constant 0 : index
    %279 = vector.load %arg10[%c0_70, %c0_71] : memref<32x32xf32, #tpu.memory_space<vmem>>, vector<32x32xf32>
    %cst_72 = arith.constant dense<0.000000e+00> : vector<16x32xf32>
    %280 = tpu.matmul %278, %279, %cst_72 {dimension_numbers = #tpu.dot_dimension_numbers<[1], [0], [0], [1], [0, 0, 1, 1], [], []>} : vector<16x32xf32>, vector<32x32xf32>, vector<16x32xf32> -> vector<16x32xf32>
    %c0_73 = arith.constant 0 : index
    %c0_74 = arith.constant 0 : index
    %281 = vector.load %arg11[%c0_73, %c0_74] : memref<1x32xf32, #tpu.memory_space<vmem>>, vector<1x32xf32>
    %282 = vector.broadcast %281 : vector<1x32xf32> to vector<16x32xf32>
    %283 = arith.addf %280, %282 : vector<16x32xf32>
    %cst_75 = arith.constant 0.000000e+00 : f32
    %284 = vector.broadcast %cst_75 : f32 to vector<16x32xf32>
    %285 = arith.cmpf ogt, %283, %284 : vector<16x32xf32>
    %cst_76 = arith.constant 0.00999999977 : f32
    %286 = vector.broadcast %cst_76 : f32 to vector<16x32xf32>
    %287 = arith.mulf %286, %283 : vector<16x32xf32>
    %288 = arith.select %285, %283, %287 : vector<16x32xi1>, vector<16x32xf32>
    %c0_77 = arith.constant 0 : index
    %c0_78 = arith.constant 0 : index
    %289 = vector.load %arg12[%c0_77, %c0_78] : memref<32x1xf32, #tpu.memory_space<vmem>>, vector<32x1xf32>
    %cst_79 = arith.constant dense<0.000000e+00> : vector<16x1xf32>
    %290 = tpu.matmul %288, %289, %cst_79 {dimension_numbers = #tpu.dot_dimension_numbers<[1], [0], [0], [1], [0, 0, 1, 1], [], []>} : vector<16x32xf32>, vector<32x1xf32>, vector<16x1xf32> -> vector<16x1xf32>
    %c0_80 = arith.constant 0 : index
    %c0_81 = arith.constant 0 : index
    %291 = vector.load %arg13[%c0_80, %c0_81] : memref<1x1xf32, #tpu.memory_space<vmem>>, vector<1x1xf32>
    %292 = vector.broadcast %291 : vector<1x1xf32> to vector<16x1xf32>
    %293 = arith.addf %290, %292 : vector<16x1xf32>
    %c0_82 = arith.constant 0 : index
    %c0_83 = arith.constant 0 : index
    %294 = vector.load %arg14[%c0_82, %c0_83] : memref<16x1xf32, #tpu.memory_space<vmem>>, vector<16x1xf32>
    tpu.vector_store %arg14[%c0_82, %c0_83], %293 {strides = array<i32>} : memref<16x1xf32, #tpu.memory_space<vmem>>, vector<16x1xf32>,
    return
  }
}

</mosaic_0001>

<bundles_post_ra>
// kernel: critic_forward.1
= control target key start
LH: loop header
LB: loop body
LE: loop exit
PB: predicated region body
PF: predicated region fallthrough
CT: control target
= control target key end

     0   :  { %s2165_s0 = inlined_call_operand.vmem [shape: f32[16,16], index: 0, kind: input, shape index: {}]   ;;  %s2166_s1 = inlined_call_operand.vmem [shape: f32[2,32], index: 1, kind: input, shape index: {}]   ;;  %s2167_s2 = inlined_call_operand.vmem [shape: f32[16,32], index: 2, kind: input, shape index: {}]   ;;  %s2168_s3 = inlined_call_operand.vmem [shape: f32[1,32], index: 3, kind: input, shape index: {}]   ;;  %s2169_s4 = inlined_call_operand.vmem [shape: f32[32,32], index: 4, kind: input, shape index: {}]   ;;  %s2170_s5 = inlined_call_operand.vmem [shape: f32[1,32], index: 5, kind: input, shape index: {}]   ;;  %s2171_s6 = inlined_call_operand.vmem [shape: f32[32,96], index: 6, kind: input, shape index: {}]   ;;  %s2172_s7 = inlined_call_operand.vmem [shape: f32[1,96], index: 7, kind: input, shape index: {}]   ;;  %s2173_s8 = inlined_call_operand.vmem [shape: f32[32,96], index: 8, kind: input, shape index: {}]   ;;  %s2174_s9 = inlined_call_operand.vmem [shape: f32[1,32], index: 9, kind: input, shape index: {}]   ;;  %s2175_s10 = inlined_call_operand.vmem [shape: f32[32,32], index: 10, kind: input, shape index: {}]   ;;  %s2176_s11 = inlined_call_operand.vmem [shape: f32[1,32], index: 11, kind: input, shape index: {}]   ;;  %s2177_s12 = inlined_call_operand.vmem [shape: f32[32,1], index: 12, kind: input, shape index: {}]   ;;  %s2178_s13 = inlined_call_operand.<no memory space> [shape: f32[1,1], index: 13, kind: input, shape index: {}]   ;;  %s2179_s14 = inlined_call_operand.vmem [shape: f32[16,1], index: 14, kind: output, shape index: {0}]   ;;  %s2180_s15 = inlined_call_operand.hbm [shape: f32[2,32], index: 15, kind: output, shape index: {1}]  }
   0x1   :  { %v21_v0 = vstv %s2178_s13 }
   0x2   :  { %22 = vst [vmem:[#allocation3] sm:$0x1] %v21_v0 }
   0x3   :  { %v55_v1 = vld [vmem:[%s2167_s2 + $0x8] sm:$0xff]  ;;  %v54_v2 = vld [vmem:[%s2167_s2] sm:$0xff]  ;;  %vm63_vm0 = vcmask 130048  }
   0x4   :  { %v52_v3 = vld [vmem:[%s2165_s0] sm:$0xff]  ;;  %1562 = vmatprep.subr.mxu0 %v55_v1 }
   0x5   :  { %1566 = vmatprep.mubr.msk.f32.mxu0 %vm63_vm0, %v52_v3 }
   0x6   :  { %23 = vsyncpa [#allocation5], 0  ;;  %1563 = vmatpush3.msra.mxu0 %v55_v1  ;;  %v53_v4 = vld [vmem:[%s2165_s0 + $0x8] sm:$0xff]  ;;  %v154_v5 = vld [vmem:[%s2169_s4 + $0x18] sm:$0xff]  ;;  %v1777_v9 = vmov 0.0   ;;  %vm162_vm3 = vcmask 261120  }
   0x7   :  { %1564 = vmatprep.subr.mxu0 %v54_v2  ;;  %1569 = vmatprep.subr.mxu1 %v154_v5  ;;  %v153_v6 = vld [vmem:[%s2169_s4 + $0x10] sm:$0xff]  ;;  %v152_v7 = vld [vmem:[%s2169_s4 + $0x8] sm:$0xff]  ;;  %v151_v8 = vld [vmem:[%s2169_s4] sm:$0xff]  ;;  %vm1778_vm4 = vmmov 0   ;;  %s1779_s30 = smov 64   ;;  %vm463_vm7 = vcmask 254976  }
   0x8   :  { %1565 = vmatpush3.msra.mxu0 %v54_v2  ;;  %1570 = vmatpush3.msra.mxu1 %v154_v5  ;;  %v1462_v10 = vld [vmem:[%s2168_s3] ss:$0 sm:$0xff]  ;;  %v1897_v18 = vld [vmem:[%s2173_s8 + $0x18] sm:$0xff]  ;;  %v1904_v20 = vld [vmem:[%s2173_s8 + $0x10] sm:$0xff]  ;;  %vm574_vm8 = vcmask 257026   ;;  %vm802_vm9 = vcmask 261126  }
   0x9   :  { %1567 = vmatmul.mubr.msk.f32.vlgmr.msra.gmra.mxu0 %vm63_vm0, %v53_v4  ;;  %1571 = vmatprep.subr.mxu1 %v153_v6  ;;  %v1913_v21 = vld [vmem:[%s2173_s8 + $0x8] sm:$0xff]  ;;  %v1920_v22 = vld [vmem:[%s2173_s8] sm:$0xff]  ;;  %v253_v24 = vld [vmem:[%s2171_s6 + $0x18] sm:$0xff]  ;;  %vm688_vm10 = vcmask 259076  }
   0xa   :  { %1572 = vmatpush3.msra.mxu1 %v153_v6  ;;  %v347_v23 = vld [vmem:[%s2166_s1] sm:$0x3]  ;;  %1580 = vmatprep.subr.mxu0 %v253_v24  ;;  %v252_v25 = vld [vmem:[%s2171_s6 + $0x10] sm:$0xff]  ;;  %v251_v27 = vld [vmem:[%s2171_s6 + $0x8] sm:$0xff] }
   0xb   :  { %1573 = vmatprep.subr.mxu1 %v152_v7  ;;  %1581 = vmatpush3.msra.mxu0 %v253_v24  ;;  %v1473_v26 = vld [vmem:[%s2174_s9] ss:$0 sm:$0xff] }
   0xc   :  { %1574 = vmatpush3.msra.mxu1 %v152_v7  ;;  %1582 = vmatprep.subr.mxu0 %v252_v25  ;;  %v250_v28 = vld [vmem:[%s2171_s6] sm:$0xff] }
   0xd   :  { %1575 = vmatprep.subr.mxu1 %v151_v8  ;;  %433 = vrot.lane.b32.xlu0 %v1473_v26, %s1779_s30  ;;  %v1465_v29 = vld [vmem:[%s2170_s5] ss:$0 sm:$0xff]  ;;  %s1780_s5 = smov 32  }
   0xe   :  { %1576 = vmatpush3.msra.mxu1 %v151_v8  ;;  %1583 = vmatpush3.msra.mxu0 %v252_v25  ;;  %v1468_v42 = vld [vmem:[%s2172_s7] ss:$0 sm:$0xff]  ;;  %s1781_s7 = smov 96  }
   0xf   :  { %1591 = vmatprep.subr.mxu1 %v1777_v9  ;;  %1584 = vmatprep.subr.mxu0 %v251_v27 }
  0x10   :  { %1585 = vmatpush3.msra.mxu0 %v251_v27 }
  0x11   :  { %1586 = vmatprep.subr.mxu0 %v250_v28 }
  0x12   :  { %1587 = vmatpush3.msra.mxu0 %v250_v28 }
  0x13   :  { %1602 = vmatprep.subr.mxu0 %v1777_v9 }
  0x7f   :  { %v1960_v36 = vpop.permute.xlu0 %433 }
  0xc9   :  { %v1568_v11 = vpop.f32.mrf.mxu0 }
  0xca   :  { %v142_v12 = vadd.f32 %v1568_v11, %v1462_v10 }
  0xcb   :  { %v136_v13 = vpop.f32.mrf.mxu0 }
  0xcc   :  { %v137_v14 = vadd.f32 %v1462_v10, %v136_v13  ;;  %v148_v15 = vmul.f32 0.01, %v142_v12  ;;  %vm146_vm1 = vcmp.gt.f32.partialorder %v142_v12, 0.0 }
  0xce   :  { %vm145_vm2 = vcmp.gt.f32.partialorder %v137_v14, 0.0  ;;  %v147_v16 = vmul.f32 0.01, %v137_v14  ;;  %v150_v19 = vsel %vm146_vm1, %v142_v12, %v148_v15 }
  0xd0   :  { %v149_v17 = vsel %vm145_vm2, %v137_v14, %v147_v16 }
  0xd1   :  { %1577 = vmatprep.mubr.msk.f32.mxu1 %vm162_vm3, %v149_v17 }
  0xd2   :  { %1578 = vmatmul.mubr.msk.f32.vlgmr.msra.gmra.mxu1 %vm162_vm3, %v150_v19 }
  0xd3   :  { %1592 = vmatpush3.msra.mxu1 %v1897_v18  ;;  %1599 = vmatprep.mubr.msk.f32.mxu1 %vm1778_vm4, %v1777_v9 }
  0xd4   :  { %1593 = vmatprep.subr.mxu1 %v1777_v9 }
  0xd5   :  { %1594 = vmatpush3.msra.mxu1 %v1904_v20 }
  0xd6   :  { %1595 = vmatprep.subr.mxu1 %v1777_v9 }
  0xd7   :  { %1596 = vmatpush3.msra.mxu1 %v1913_v21 }
  0xd8   :  { %1597 = vmatprep.subr.mxu1 %v1777_v9 }
  0xd9   :  { %1598 = vmatpush3.msra.mxu1 %v1920_v22 }
  0xda   :  { %1600 = vmatmul.mubr.msk.f32.vlgmr.msra.gmra.mxu1 %vm162_vm3, %v347_v23  ;;  %1613 = vmatprep.subr.mxu1 %v1777_v9 }
  0xdb   :  { %1614 = vmatpush3.msra.mxu1 %v1897_v18  ;;  %1621 = vmatprep.mubr.msk.f32.mxu1 %vm1778_vm4, %v1777_v9 }
  0xdc   :  { %1615 = vmatprep.subr.mxu1 %v1777_v9 }
  0xdd   :  { %1616 = vmatpush3.msra.mxu1 %v1904_v20 }
  0xde   :  { %1617 = vmatprep.subr.mxu1 %v1777_v9 }
  0xdf   :  { %1618 = vmatpush3.msra.mxu1 %v1913_v21 }
  0xe0   :  { %1619 = vmatprep.subr.mxu1 %v1777_v9 }
  0xe1   :  { %1620 = vmatpush3.msra.mxu1 %v1920_v22 }
  0xe2   :  { %1635 = vmatprep.subr.mxu1 %v1777_v9 }
 0x192   :  { %v1579_v30 = vpop.f32.mrf.mxu1 }
 0x193   :  { %v241_v31 = vadd.f32 %v1579_v30, %v1465_v29 }
 0x194   :  { %v235_v32 = vpop.f32.mrf.mxu1 }
 0x195   :  { %v236_v33 = vadd.f32 %v1465_v29, %v235_v32  ;;  %v247_v34 = vmul.f32 0.01, %v241_v31  ;;  %vm245_vm5 = vcmp.gt.f32.partialorder %v241_v31, 0.0 }
 0x197   :  { %vm244_vm6 = vcmp.gt.f32.partialorder %v236_v33, 0.0  ;;  %v246_v35 = vmul.f32 0.01, %v236_v33  ;;  %v249_v38 = vsel %vm245_vm5, %v241_v31, %v247_v34 }
 0x199   :  { %v248_v37 = vsel %vm244_vm6, %v236_v33, %v246_v35 }
 0x19a   :  { %1588 = vmatprep.mubr.msk.f32.mxu0 %vm162_vm3, %v248_v37  ;;  %v417_v39 = vpop.f32.mrf.mxu1 }
 0x19b   :  { %1589 = vmatmul.mubr.msk.f32.vlgmr.msra.gmra.mxu0 %vm162_vm3, %v249_v38  ;;  %v436_v40 = vadd.f32 %v1960_v36, %v417_v39 }
 0x19c   :  { %v1601_v41 = vpop.f32.mrf.mxu1  ;;  %1603 = vmatpush3.msra.mxu0 %v1897_v18  ;;  %1610 = vmatprep.mubr.msk.f32.mxu0 %vm1778_vm4, %v1777_v9 }
 0x19d   :  { %438 = vrot.lane.b32.xlu0 %v436_v40, %s1779_s30  ;;  %1604 = vmatprep.subr.mxu0 %v1777_v9 }
 0x19e   :  { %1605 = vmatpush3.msra.mxu0 %v1904_v20 }
 0x19f   :  { %1606 = vmatprep.subr.mxu0 %v1777_v9 }
 0x1a0   :  { %1607 = vmatpush3.msra.mxu0 %v1913_v21 }
 0x1a1   :  { %454 = vrot.lane.b32.xlu0 %v347_v23, %s1780_s5  ;;  %1608 = vmatprep.subr.mxu0 %v1777_v9 }
 0x1a2   :  { %1609 = vmatpush3.msra.mxu0 %v1920_v22 }
 0x1a3   :  { %1624 = vmatprep.subr.mxu0 %v1777_v9 }
 0x20f   :  { %v439_v52 = vpop.permute.xlu0 %438 }
 0x213   :  { %v455_v57 = vpop.permute.xlu0 %454 }
 0x25b   :  { %v1590_v43 = vpop.f32.mrf.mxu0 }
 0x25c   :  { %v1979_v44 = vadd.f32 %v1590_v43, %v1468_v42 }
 0x25d   :  { %v333_v45 = vpop.f32.mrf.mxu0 }
 0x25e   :  { %v1981_v46 = vadd.f32 %v1468_v42, %v333_v45 }
 0x260   :  { %v421_v47 = vadd.f32 %v417_v39, %v1981_v46 }
 0x262   :  { %v1472_v48 = vmul.f32 -1.442695, %v421_v47 }
 0x264   :  { %1707 = vpow2.f32 %v1472_v48 }
 0x271   :  { %v1708_v49 = vpop.eup %1707 }
 0x272   :  { %v425_v50 = vadd.f32 1.0, %v1708_v49 }
 0x274   :  { %1709 = vrcp.f32 %v425_v50 }
 0x281   :  { %v1710_v51 = vpop.eup %1709 }
 0x282   :  { %v441_v53 = vmul.f32 %v1710_v51, %v439_v52  ;;  %v448_v58 = vsub.f32 1.0, %v1710_v51  ;;  %v457_v60 = vmul.f32 %v1710_v51, %v455_v57 }
 0x284   :  { %443 = vrot.lane.b32.xlu1 %v441_v53, %s1779_s30 }
 0x2f6   :  { %v444_v54 = vpop.permute.xlu1 %443 }
 0x2f7   :  { %v446_v55 = vadd.f32 %v444_v54, %v1981_v46 }
 0x2f9   :  { %1711 = vtanh.f32 %v446_v55 }
 0x306   :  { %v1712_v56 = vpop.eup %1711 }
 0x307   :  { %450 = vrot.lane.b32.xlu1 %v1712_v56, %s1781_s7 }
 0x379   :  { %v451_v59 = vpop.permute.xlu1 %450 }
 0x37a   :  { %v453_v61 = vmul.f32 %v451_v59, %v448_v58 }
 0x37c   :  { %v458_v62 = vadd.f32 %v457_v60, %v453_v61 }
 0x37e   :  { %460 = vrot.lane.b32.xlu1 %v458_v62, %s1781_s7  ;;  %v566_v16 = vrot.slane %v458_v62, 6 }
 0x3f0   :  { %v461_v63 = vpop.permute.xlu1 %460 }
 0x3f1   :  { %464 = vst.msk [vmem:[#allocation2] sm:$0x3] %vm463_vm7, %v461_v63  ;;  %1611 = vmatmul.mubr.msk.f32.vlgmr.msra.gmra.mxu0 %vm162_vm3, %v461_v63 }
 0x3f2   :  { %1625 = vmatpush3.msra.mxu0 %v1897_v18  ;;  %1632 = vmatprep.mubr.msk.f32.mxu0 %vm1778_vm4, %v1777_v9 }
 0x3f3   :  { %1626 = vmatprep.subr.mxu0 %v1777_v9 }
 0x3f4   :  { %1627 = vmatpush3.msra.mxu0 %v1904_v20 }
 0x3f5   :  { %1628 = vmatprep.subr.mxu0 %v1777_v9 }
 0x3f6   :  { %1629 = vmatpush3.msra.mxu0 %v1913_v21 }
 0x3f7   :  { %1630 = vmatprep.subr.mxu0 %v1777_v9 }
 0x3f8   :  { %1631 = vmatpush3.msra.mxu0 %v1920_v22 }
 0x3f9   :  { %1646 = vmatprep.subr.mxu0 %v1777_v9 }
 0x4b1   :  { %v533_v0 = vpop.f32.mrf.mxu0 }
 0x4b2   :  { %v547_v1 = vadd.f32 %v533_v0, %v1960_v36  ;;  %v538_v4 = vrot.slane %v533_v0, 6 }
 0x4b3   :  { %v1612_v2 = vpop.f32.mrf.mxu0 }
 0x4b4   :  { %v549_v3 = vrot.slane %v547_v1, 6  ;;  %v540_v5 = vadd.f32 %v538_v4, %v1981_v46 }
 0x4b6   :  { %550 = vrot.lane.b32.xlu0 %v549_v3, %s1779_s30  ;;  %v1475_v6 = vmul.f32 -1.442695, %v540_v5 }
 0x4b8   :  { %1713 = vpow2.f32 %v1475_v6 }
 0x4c5   :  { %v1714_v7 = vpop.eup %1713 }
 0x4c6   :  { %v544_v8 = vadd.f32 1.0, %v1714_v7 }
 0x4c8   :  { %1715 = vrcp.f32 %v544_v8 }
 0x4d5   :  { %v1716_v10 = vpop.eup %1715 }
 0x4d6   :  { %v560_v17 = vsub.f32 1.0, %v1716_v10  ;;  %v568_v24 = vmul.f32 %v1716_v10, %v566_v16 }
 0x528   :  { %v551_v11 = vpop.permute.xlu0 %550 }
 0x529   :  { %v553_v12 = vmul.f32 %v1716_v10, %v551_v11 }
 0x52b   :  { %555 = vrot.lane.b32.xlu1 %v553_v12, %s1779_s30 }
 0x59d   :  { %v556_v13 = vpop.permute.xlu1 %555 }
 0x59e   :  { %v558_v14 = vadd.f32 %v556_v13, %v1981_v46 }
 0x5a0   :  { %1717 = vtanh.f32 %v558_v14 }
 0x5ad   :  { %v1718_v15 = vpop.eup %1717 }
 0x5ae   :  { %562 = vrot.lane.b32.xlu0 %v1718_v15, %s1781_s7 }
 0x620   :  { %v563_v19 = vpop.permute.xlu0 %562 }
 0x621   :  { %v565_v23 = vmul.f32 %v563_v19, %v560_v17 }
 0x623   :  { %v2006_v25 = vadd.f32 %v568_v24, %v565_v23 }
 0x625   :  { %v576_v26 = vrot.slane %v2006_v25, 2  ;;  %v680_v47 = vrot.slane %v2006_v25, 6 }
 0x627   :  { %577 = vrot.lane.b32.xlu1 %v576_v26, %s1781_s7 }
 0x699   :  { %v578_v27 = vpop.permute.xlu1 %577 }
 0x69a   :  { %1622 = vmatmul.mubr.msk.f32.vlgmr.msra.gmra.mxu1 %vm162_vm3, %v578_v27 }
 0x69b   :  { %1636 = vmatpush3.msra.mxu1 %v1897_v18  ;;  %1643 = vmatprep.mubr.msk.f32.mxu1 %vm1778_vm4, %v1777_v9 }
 0x69c   :  { %1637 = vmatprep.subr.mxu1 %v1777_v9 }
 0x69d   :  { %1638 = vmatpush3.msra.mxu1 %v1904_v20 }
 0x69e   :  { %1639 = vmatprep.subr.mxu1 %v1777_v9 }
 0x69f   :  { %1640 = vmatpush3.msra.mxu1 %v1913_v21 }
 0x6a0   :  { %1641 = vmatprep.subr.mxu1 %v1777_v9 }
 0x6a1   :  { %1642 = vmatpush3.msra.mxu1 %v1920_v22 }
 0x6a2   :  { %1657 = vmatprep.subr.mxu1 %v1777_v9 }
 0x75a   :  { %v647_v28 = vpop.f32.mrf.mxu1 }
 0x75b   :  { %v661_v29 = vadd.f32 %v647_v28, %v1960_v36  ;;  %v652_v32 = vrot.slane %v647_v28, 4 }
 0x75c   :  { %v1623_v30 = vpop.f32.mrf.mxu1 }
 0x75d   :  { %v663_v31 = vrot.slane %v661_v29, 4  ;;  %v654_v33 = vadd.f32 %v652_v32, %v1981_v46 }
 0x75f   :  { %664 = vrot.lane.b32.xlu0 %v663_v31, %s1779_s30  ;;  %v1477_v34 = vmul.f32 -1.442695, %v654_v33 }
 0x761   :  { %1719 = vpow2.f32 %v1477_v34 }
 0x76e   :  { %v1720_v35 = vpop.eup %1719 }
 0x76f   :  { %v658_v37 = vadd.f32 1.0, %v1720_v35 }
 0x771   :  { %1721 = vrcp.f32 %v658_v37 }
 0x77e   :  { %v1722_v38 = vpop.eup %1721 }
 0x77f   :  { %v674_v45 = vsub.f32 1.0, %v1722_v38  ;;  %v682_v49 = vmul.f32 %v1722_v38, %v680_v47 }
 0x7d1   :  { %v665_v39 = vpop.permute.xlu0 %664 }
 0x7d2   :  { %v667_v40 = vmul.f32 %v1722_v38, %v665_v39 }
 0x7d4   :  { %669 = vrot.lane.b32.xlu1 %v667_v40, %s1779_s30 }
 0x846   :  { %v670_v41 = vpop.permute.xlu1 %669 }
 0x847   :  { %v672_v42 = vadd.f32 %v670_v41, %v1981_v46 }
 0x849   :  { %1723 = vtanh.f32 %v672_v42 }
 0x856   :  { %v1724_v43 = vpop.eup %1723 }
 0x857   :  { %676 = vrot.lane.b32.xlu0 %v1724_v43, %s1781_s7 }
 0x8c9   :  { %v677_v48 = vpop.permute.xlu0 %676 }
 0x8ca   :  { %v679_v50 = vmul.f32 %v677_v48, %v674_v45 }
 0x8cc   :  { %v2028_v51 = vadd.f32 %v682_v49, %v679_v50 }
 0x8ce   :  { %v690_v52 = vrot.slane %v2028_v51, 4  ;;  %v794_v6 = vrot.slane %v2028_v51, 6 }
 0x8d0   :  { %691 = vrot.lane.b32.xlu1 %v690_v52, %s1781_s7 }
 0x942   :  { %v692_v53 = vpop.permute.xlu1 %691 }
 0x943   :  { %1633 = vmatmul.mubr.msk.f32.vlgmr.msra.gmra.mxu0 %vm162_vm3, %v692_v53 }
 0x944   :  { %1647 = vmatpush3.msra.mxu0 %v1897_v18  ;;  %1654 = vmatprep.mubr.msk.f32.mxu0 %vm1778_vm4, %v1777_v9 }
 0x945   :  { %1648 = vmatprep.subr.mxu0 %v1777_v9 }
 0x946   :  { %1649 = vmatpush3.msra.mxu0 %v1904_v20 }
 0x947   :  { %1650 = vmatprep.subr.mxu0 %v1777_v9 }
 0x948   :  { %1651 = vmatpush3.msra.mxu0 %v1913_v21 }
 0x949   :  { %1652 = vmatprep.subr.mxu0 %v1777_v9 }
 0x94a   :  { %1653 = vmatpush3.msra.mxu0 %v1920_v22 }
 0x94b   :  { %1668 = vmatprep.subr.mxu0 %v1777_v9 }
 0xa03   :  { %v761_v54 = vpop.f32.mrf.mxu0 }
 0xa04   :  { %v775_v55 = vadd.f32 %v761_v54, %v1960_v36  ;;  %v766_v58 = vrot.slane %v761_v54, 2 }
 0xa05   :  { %v1634_v56 = vpop.f32.mrf.mxu0 }
 0xa06   :  { %v777_v57 = vrot.slane %v775_v55, 2  ;;  %v768_v59 = vadd.f32 %v766_v58, %v1981_v46 }
 0xa08   :  { %778 = vrot.lane.b32.xlu0 %v777_v57, %s1779_s30  ;;  %v1479_v60 = vmul.f32 -1.442695, %v768_v59 }
 0xa0a   :  { %1725 = vpow2.f32 %v1479_v60 }
 0xa17   :  { %v1726_v61 = vpop.eup %1725 }
 0xa18   :  { %v772_v62 = vadd.f32 1.0, %v1726_v61 }
 0xa1a   :  { %1727 = vrcp.f32 %v772_v62 }
 0xa27   :  { %v1728_v63 = vpop.eup %1727 }
 0xa28   :  { %v788_v5 = vsub.f32 1.0, %v1728_v63  ;;  %v796_v8 = vmul.f32 %v1728_v63, %v794_v6 }
 0xa7a   :  { %v779_v0 = vpop.permute.xlu0 %778 }
 0xa7b   :  { %v781_v1 = vmul.f32 %v1728_v63, %v779_v0 }
 0xa7d   :  { %783 = vrot.lane.b32.xlu1 %v781_v1, %s1779_s30 }
 0xaef   :  { %v784_v2 = vpop.permute.xlu1 %783 }
 0xaf0   :  { %v786_v3 = vadd.f32 %v784_v2, %v1981_v46 }
 0xaf2   :  { %1729 = vtanh.f32 %v786_v3 }
 0xaff   :  { %v1730_v4 = vpop.eup %1729 }
 0xb00   :  { %790 = vrot.lane.b32.xlu0 %v1730_v4, %s1781_s7 }
 0xb72   :  { %v791_v7 = vpop.permute.xlu0 %790 }
 0xb73   :  { %v793_v10 = vmul.f32 %v791_v7, %v788_v5 }
 0xb75   :  { %v2050_v11 = vadd.f32 %v796_v8, %v793_v10 }
 0xb77   :  { %v804_v12 = vrot.slane %v2050_v11, 6 }
 0xb79   :  { %805 = vrot.lane.b32.xlu1 %v804_v12, %s1781_s7 }
 0xbeb   :  { %v806_v13 = vpop.permute.xlu1 %805 }
 0xbec   :  { %1644 = vmatmul.mubr.msk.f32.vlgmr.msra.gmra.mxu1 %vm162_vm3, %v806_v13 }
 0xbed   :  { %1658 = vmatpush3.msra.mxu1 %v1897_v18  ;;  %1665 = vmatprep.mubr.msk.f32.mxu1 %vm1778_vm4, %v1777_v9 }
 0xbee   :  { %1659 = vmatprep.subr.mxu1 %v1777_v9 }
 0xbef   :  { %1660 = vmatpush3.msra.mxu1 %v1904_v20 }
 0xbf0   :  { %1661 = vmatprep.subr.mxu1 %v1777_v9 }
 0xbf1   :  { %1662 = vmatpush3.msra.mxu1 %v1913_v21 }
 0xbf2   :  { %1663 = vmatprep.subr.mxu1 %v1777_v9 }
 0xbf3   :  { %1664 = vmatpush3.msra.mxu1 %v1920_v22 }
 0xcac   :  { %v875_v46 = vpop.f32.mrf.mxu1 }
 0xcad   :  { %v886_v14 = vadd.f32 %v875_v46, %v1960_v36  ;;  %v879_v16 = vadd.f32 %v875_v46, %v1979_v44 }
 0xcae   :  { %v1645_v15 = vpop.f32.mrf.mxu1 }
 0xcaf   :  { %888 = vrot.lane.b32.xlu0 %v886_v14, %s1779_s30  ;;  %v1481_v17 = vmul.f32 -1.442695, %v879_v16 }
 0xcb1   :  { %1731 = vpow2.f32 %v1481_v17 }
 0xcbe   :  { %v1732_v19 = vpop.eup %1731 }
 0xcbf   :  { %v883_v23 = vadd.f32 1.0, %v1732_v19 }
 0xcc1   :  { %1733 = vrcp.f32 %v883_v23 }
 0xcce   :  { %v1734_v24 = vpop.eup %1733 }
 0xccf   :  { %v898_v31 = vsub.f32 1.0, %v1734_v24  ;;  %v905_v33 = vmul.f32 %v1734_v24, %v804_v12 }
 0xd21   :  { %v889_v26 = vpop.permute.xlu0 %888 }
 0xd22   :  { %v891_v27 = vmul.f32 %v1734_v24, %v889_v26 }
 0xd24   :  { %893 = vrot.lane.b32.xlu1 %v891_v27, %s1779_s30 }
 0xd96   :  { %v894_v28 = vpop.permute.xlu1 %893 }
 0xd97   :  { %v896_v29 = vadd.f32 %v894_v28, %v1979_v44 }
 0xd99   :  { %1735 = vtanh.f32 %v896_v29 }
 0xda6   :  { %v1736_v30 = vpop.eup %1735 }
 0xda7   :  { %900 = vrot.lane.b32.xlu0 %v1736_v30, %s1781_s7 }
 0xe19   :  { %v901_v32 = vpop.permute.xlu0 %900 }
 0xe1a   :  { %v903_v34 = vmul.f32 %v901_v32, %v898_v31 }
 0xe1c   :  { %v906_v35 = vadd.f32 %v905_v33, %v903_v34 }
 0xe1e   :  { %908 = vrot.lane.b32.xlu1 %v906_v35, %s1781_s7  ;;  %v1013_v50 = vrot.slane %v906_v35, 6 }
 0xe90   :  { %v909_v37 = vpop.permute.xlu1 %908 }
 0xe91   :  { %911 = vst.msk [vmem:[#allocation2 + $0x8] sm:$0x3] %vm463_vm7, %v909_v37  ;;  %1655 = vmatmul.mubr.msk.f32.vlgmr.msra.gmra.mxu0 %vm162_vm3, %v909_v37 }
 0xe92   :  { %1669 = vmatpush3.msra.mxu0 %v1897_v18  ;;  %1676 = vmatprep.mubr.msk.f32.mxu0 %vm1778_vm4, %v1777_v9 }
 0xe93   :  { %1670 = vmatprep.subr.mxu0 %v1777_v9 }
 0xe94   :  { %1671 = vmatpush3.msra.mxu0 %v1904_v20 }
 0xe95   :  { %1672 = vmatprep.subr.mxu0 %v1777_v9 }
 0xe96   :  { %1673 = vmatpush3.msra.mxu0 %v1913_v21 }
 0xe97   :  { %1674 = vmatprep.subr.mxu0 %v1777_v9 }
 0xe98   :  { %1675 = vmatpush3.msra.mxu0 %v1920_v22 }
 0xf51   :  { %v980_v38 = vpop.f32.mrf.mxu0 }
 0xf52   :  { %v994_v39 = vadd.f32 %v980_v38, %v1960_v36  ;;  %v985_v41 = vrot.slane %v980_v38, 6 }
 0xf53   :  { %v1656_v40 = vpop.f32.mrf.mxu0 }
 0xf54   :  { %v996_v18 = vrot.slane %v994_v39, 6  ;;  %v987_v42 = vadd.f32 %v985_v41, %v1979_v44 }
 0xf56   :  { %997 = vrot.lane.b32.xlu0 %v996_v18, %s1779_s30  ;;  %v1483_v43 = vmul.f32 -1.442695, %v987_v42  ;;  %v1252_v18 = vld [vmem:[%s2175_s10 + $0x8] sm:$0xff] }
 0xf58   :  { %1737 = vpow2.f32 %v1483_v43 }
 0xf65   :  { %v1738_v20 = vpop.eup %1737 }
 0xf66   :  { %v991_v45 = vadd.f32 1.0, %v1738_v20 }
 0xf68   :  { %1739 = vrcp.f32 %v991_v45 }
 0xf75   :  { %v1740_v21 = vpop.eup %1739 }
 0xf76   :  { %v1007_v52 = vsub.f32 1.0, %v1740_v21  ;;  %v1015_v55 = vmul.f32 %v1740_v21, %v1013_v50  ;;  %v1352_v50 = vld [vmem:[%s2177_s12 + $0x18] sm:$0xff] }
 0xf77   :  { %1690 = vmatprep.subr.mxu0 %v1352_v50 }
 0xfc8   :  { %v998_v47 = vpop.permute.xlu0 %997 }
 0xfc9   :  { %v1000_v9 = vmul.f32 %v1740_v21, %v998_v47 }
 0xfcb   :  { %1002 = vrot.lane.b32.xlu1 %v1000_v9, %s1779_s30 }
0x103d   :  { %v1003_v22 = vpop.permute.xlu1 %1002 }
0x103e   :  { %v1005_v48 = vadd.f32 %v1003_v22, %v1979_v44 }
0x1040   :  { %1741 = vtanh.f32 %v1005_v48 }
0x104d   :  { %v1742_v49 = vpop.eup %1741 }
0x104e   :  { %1009 = vrot.lane.b32.xlu0 %v1742_v49, %s1781_s7 }
0x10c0   :  { %v1010_v53 = vpop.permute.xlu0 %1009 }
0x10c1   :  { %v1012_v54 = vmul.f32 %v1010_v53, %v1007_v52  ;;  %v1351_v52 = vld [vmem:[%s2177_s12 + $0x10] sm:$0xff]  ;;  %v1350_v53 = vld [vmem:[%s2177_s12 + $0x8] sm:$0xff] }
0x10c3   :  { %v2088_v56 = vadd.f32 %v1015_v55, %v1012_v54  ;;  %v1349_v54 = vld [vmem:[%s2177_s12] sm:$0xff]  ;;  %s1782_s12 = smov [#allocation4]  }
0x10c4   :  { %v1488_v55 = vld [vmem:[%s2176_s11] ss:$0 sm:$0xff]  ;;  %s1452_s0 = sshll.u32 %s1782_s12, 4  ;;  %s1453_s0 = int_to_ptr.vmem [resolvable:$true] %s1452_s0 }
0x10c5   :  { %v1022_v57 = vrot.slane %v2088_v56, 2  ;;  %v1126_v13 = vrot.slane %v2088_v56, 6  ;;  %s1755_s17 = scalar_lea.vmem %s1453_s0, 32  ;;  %p1760_p1 = scmp.lt.s32.totalorder %s1453_s0, %s1453_s0 }
0x10c6   :  { %p1756_p0 = scmp.ne.s32.totalorder %s1453_s0, %s1755_s17  ;;  %p1761_p2 = scmp.lt.s32.totalorder %s1755_s17, %s1755_s17 }
0x10c7   :  { %1023 = vrot.lane.b32.xlu1 %v1022_v57, %s1781_s7 }
0x10c8   :  { %p1762_p3 = por %p1761_p2, %p1760_p1 }
0x10ca   :  { %p1763_p4 = pnand %p1762_p3, %p1756_p0 }
0x1139   :  { %v1024_v58 = vpop.permute.xlu1 %1023 }
0x113a   :  { %1666 = vmatmul.mubr.msk.f32.vlgmr.msra.gmra.mxu1 %vm162_vm3, %v1024_v58 }
0x11fa   :  { %v1093_v59 = vpop.f32.mrf.mxu1 }
0x11fb   :  { %v1107_v60 = vadd.f32 %v1093_v59, %v1960_v36  ;;  %v1098_v63 = vrot.slane %v1093_v59, 4 }
0x11fc   :  { %v1667_v61 = vpop.f32.mrf.mxu1 }
0x11fd   :  { %v1109_v62 = vrot.slane %v1107_v60, 4  ;;  %v1100_v0 = vadd.f32 %v1098_v63, %v1979_v44 }
0x11ff   :  { %1110 = vrot.lane.b32.xlu0 %v1109_v62, %s1779_s30  ;;  %v1485_v1 = vmul.f32 -1.442695, %v1100_v0 }
0x1201   :  { %1743 = vpow2.f32 %v1485_v1 }
0x120e   :  { %v1744_v2 = vpop.eup %1743 }
0x120f   :  { %v1104_v3 = vadd.f32 1.0, %v1744_v2 }
0x1211   :  { %1745 = vrcp.f32 %v1104_v3 }
0x121e   :  { %v1746_v4 = vpop.eup %1745 }
0x121f   :  { %v1120_v12 = vsub.f32 1.0, %v1746_v4  ;;  %v1128_v14 = vmul.f32 %v1746_v4, %v1126_v13 }
0x1271   :  { %v1111_v5 = vpop.permute.xlu0 %1110 }
0x1272   :  { %v1113_v6 = vmul.f32 %v1746_v4, %v1111_v5 }
0x1274   :  { %1115 = vrot.lane.b32.xlu1 %v1113_v6, %s1779_s30 }
0x12e6   :  { %v1116_v7 = vpop.permute.xlu1 %1115 }
0x12e7   :  { %v1118_v8 = vadd.f32 %v1116_v7, %v1979_v44 }
0x12e9   :  { %1747 = vtanh.f32 %v1118_v8 }
0x12f6   :  { %v1748_v10 = vpop.eup %1747 }
0x12f7   :  { %1122 = vrot.lane.b32.xlu0 %v1748_v10, %s1781_s7 }
0x1369   :  { %v1123_v46 = vpop.permute.xlu0 %1122 }
0x136a   :  { %v1125_v15 = vmul.f32 %v1123_v46, %v1120_v12 }
0x136c   :  { %v1129_v16 = vadd.f32 %v1128_v14, %v1125_v15 }
0x136e   :  { %v1135_v17 = vrot.slane %v1129_v16, 4  ;;  %v1239_v42 = vrot.slane %v1129_v16, 6 }
0x1370   :  { %1136 = vrot.lane.b32.xlu1 %v1135_v17, %s1781_s7 }
0x13e2   :  { %v1137_v19 = vpop.permute.xlu1 %1136 }
0x13e3   :  { %1677 = vmatmul.mubr.msk.f32.vlgmr.msra.gmra.mxu0 %vm162_vm3, %v1137_v19 }
0x13e4   :  { %1691 = vmatpush3.msra.mxu0 %v1352_v50 }
0x13e5   :  { %1692 = vmatprep.subr.mxu0 %v1351_v52 }
0x13e6   :  { %1693 = vmatpush3.msra.mxu0 %v1351_v52 }
0x13e7   :  { %1694 = vmatprep.subr.mxu0 %v1350_v53 }
0x13e8   :  { %1695 = vmatpush3.msra.mxu0 %v1350_v53 }
0x13e9   :  { %1696 = vmatprep.subr.mxu0 %v1349_v54 }
0x13ea   :  { %1697 = vmatpush3.msra.mxu0 %v1349_v54 }
0x14a3   :  { %v1206_v23 = vpop.f32.mrf.mxu0 }
0x14a4   :  { %v1220_v24 = vadd.f32 %v1206_v23, %v1960_v36  ;;  %v1211_v28 = vrot.slane %v1206_v23, 2 }
0x14a5   :  { %v1678_v26 = vpop.f32.mrf.mxu0 }
0x14a6   :  { %v1222_v27 = vrot.slane %v1220_v24, 2  ;;  %v1213_v29 = vadd.f32 %v1211_v28, %v1979_v44 }
0x14a8   :  { %1223 = vrot.lane.b32.xlu0 %v1222_v27, %s1779_s30  ;;  %v1487_v30 = vmul.f32 -1.442695, %v1213_v29 }
0x14aa   :  { %1749 = vpow2.f32 %v1487_v30 }
0x14b7   :  { %v1750_v31 = vpop.eup %1749 }
0x14b8   :  { %v1217_v32 = vadd.f32 1.0, %v1750_v31 }
0x14ba   :  { %1751 = vrcp.f32 %v1217_v32 }
0x14c7   :  { %v1752_v33 = vpop.eup %1751 }
0x14c8   :  { %v1233_v41 = vsub.f32 1.0, %v1752_v33  ;;  %v1241_v20 = vmul.f32 %v1752_v33, %v1239_v42 }
0x151a   :  { %v1224_v34 = vpop.permute.xlu0 %1223 }
0x151b   :  { %v1226_v35 = vmul.f32 %v1752_v33, %v1224_v34 }
0x151d   :  { %1228 = vrot.lane.b32.xlu1 %v1226_v35, %s1779_s30 }
0x1521   :  { %571 = vrot.lane.b32.xlu1 %v2006_v25, %s1781_s7 }
0x1525   :  { %799 = vrot.lane.b32.xlu1 %v2050_v11, %s1781_s7  ;;  %v1253_v11 = vld [vmem:[%s2175_s10 + $0x10] sm:$0xff] }
0x1529   :  { %1131 = vrot.lane.b32.xlu1 %v1129_v16, %s1781_s7 }
0x158f   :  { %v1229_v36 = vpop.permute.xlu1 %1228 }
0x1590   :  { %v1231_v37 = vadd.f32 %v1229_v36, %v1979_v44  ;;  %v1254_v44 = vld [vmem:[%s2175_s10 + $0x18] sm:$0xff] }
0x1591   :  { %1679 = vmatprep.subr.mxu1 %v1254_v44 }
0x1592   :  { %1753 = vtanh.f32 %v1231_v37  ;;  %1680 = vmatpush3.msra.mxu1 %v1254_v44 }
0x1593   :  { %v572_v38 = vpop.permute.xlu1 %571  ;;  %1681 = vmatprep.subr.mxu1 %v1253_v11 }
0x1594   :  { %575 = vst.msk [vmem:[#allocation2] sm:$0xc] %vm574_vm8, %v572_v38  ;;  %1682 = vmatpush3.msra.mxu1 %v1253_v11 }
0x1595   :  { %1683 = vmatprep.subr.mxu1 %v1252_v18 }
0x1596   :  { %1684 = vmatpush3.msra.mxu1 %v1252_v18 }
0x1597   :  { %v800_v39 = vpop.permute.xlu1 %799 }
0x1598   :  { %803 = vst.msk [vmem:[#allocation2] sm:$0xc0] %vm802_vm9, %v800_v39 }
0x159b   :  { %v1132_v40 = vpop.permute.xlu1 %1131 }
0x159c   :  { %1134 = vst.msk [vmem:[#allocation2 + $0x8] sm:$0x30] %vm688_vm10, %v1132_v40 }
0x159f   :  { %v1754_v25 = vpop.eup %1753 }
0x15a0   :  { %1235 = vrot.lane.b32.xlu0 %v1754_v25, %s1781_s7 }
0x15a4   :  { %685 = vrot.lane.b32.xlu0 %v2028_v51, %s1781_s7  ;;  %v1251_v51 = vld [vmem:[%s2175_s10] sm:$0xff] }
0x15a5   :  { %1685 = vmatprep.subr.mxu1 %v1251_v51 }
0x15a6   :  { %1686 = vmatpush3.msra.mxu1 %v1251_v51 }
0x15a8   :  { %1018 = vrot.lane.b32.xlu0 %v2088_v56, %s1781_s7 }
0x1612   :  { %v1236_v43 = vpop.permute.xlu0 %1235 }
0x1613   :  { %v1238_v45 = vmul.f32 %v1236_v43, %v1233_v41 }
0x1615   :  { %v1242_v21 = vadd.f32 %v1241_v20, %v1238_v45 }
0x1616   :  { %v686_v47 = vpop.permute.xlu0 %685 }
0x1617   :  { %689 = vst.msk [vmem:[#allocation2] sm:$0x30] %vm688_vm10, %v686_v47  ;;  %1244 = vrot.lane.b32.xlu0 %v1242_v21, %s1781_s7 }
0x161a   :  { %v1019_v9 = vpop.permute.xlu0 %1018 }
0x161b   :  { %1021 = vst.msk [vmem:[#allocation2 + $0x8] sm:$0xc] %vm574_vm8, %v1019_v9 }
0x161e   :  { %v1249_v22 = vld [vmem:[#allocation2] sm:$0xff] }
0x161f   :  { %1687 = vmatprep.mubr.msk.f32.mxu1 %vm162_vm3, %v1249_v22 }
0x1689   :  { %v1245_v48 = vpop.permute.xlu0 %1244 }
0x168a   :  { %1247 = vst.msk [vmem:[#allocation2 + $0x8] sm:$0xc0] %vm802_vm9, %v1245_v48  ;;  %1248 = vst.msk [vmem:[#allocation4 - $0x6] sm:$0xc0] %vm802_vm9, %v1245_v48 }
0x1691   :  { %v1250_v49 = vld [vmem:[#allocation2 + $0x8] sm:$0xff] }
0x1692   :  { %1688 = vmatmul.mubr.msk.f32.vlgmr.msra.gmra.mxu1 %vm162_vm3, %v1250_v49 }
0x1752   :  { %v1689_v56 = vpop.f32.mrf.mxu1 }
0x1753   :  { %v1340_v57 = vadd.f32 %v1689_v56, %v1488_v55 }
0x1754   :  { %v1334_v58 = vpop.f32.mrf.mxu1 }
0x1755   :  { %v1335_v59 = vadd.f32 %v1488_v55, %v1334_v58  ;;  %v1346_v60 = vmul.f32 0.01, %v1340_v57  ;;  %vm1344_vm11 = vcmp.gt.f32.partialorder %v1340_v57, 0.0 }
0x1757   :  { %vm1343_vm12 = vcmp.gt.f32.partialorder %v1335_v59, 0.0  ;;  %v1345_v61 = vmul.f32 0.01, %v1335_v59  ;;  %v1348_v63 = vsel %vm1344_vm11, %v1340_v57, %v1346_v60 }
0x1759   :  { %v1347_v62 = vsel %vm1343_vm12, %v1335_v59, %v1345_v61 }
0x175a   :  { %1698 = vmatprep.mubr.msk.f32.mxu0 %vm162_vm3, %v1347_v62 }
0x175b   :  { %1699 = vmatmul.mubr.msk.f32.vlgmr.msra.gmra.mxu0 %vm162_vm3, %v1348_v63 }
0x175c   :  { %1766 = shalt.err (!%p1763_p4)
}
0x175d   :  { %1455 = dma.vmem_to_hbm [thread:$0]  %s1453_s0, 32, %s2180_s15, [#allocation5]   ;;  %v1491_v0 = vld [vmem:[#allocation3] ss:$0 sm:$0xff]  ;;  %vm1441_vm13 = vcmask 7168  }
0x181b   :  { %v1700_v1 = vpop.f32.mrf.mxu0 }
0x181c   :  { %v1438_v2 = vadd.f32 %v1700_v1, %v1491_v0 }
0x181d   :  { %v1432_v3 = vpop.f32.mrf.mxu0 }
0x181e   :  { %1443 = vst.msk [vmem:[%s2179_s14 + $0x8] sm:$0xff] %vm1441_vm13, %v1438_v2  ;;  %v1433_v4 = vadd.f32 %v1491_v0, %v1432_v3 }
0x1820   :  { %1442 = vst.msk [vmem:[%s2179_s14] sm:$0xff] %vm1441_vm13, %v1433_v4 }
0x1821   :  { %1775 = dma.done.wait [#allocation5], 32  }
0x1822   :  { %1776 = vsyncadd [#allocation5], 4294967264 }
0x1823   :  { %1461 = vsyncpa [#allocation5], 1 }

</bundles_post_ra>
